<compile_context>
chip_gen: v6e
topology: v6e:2x2x1
jax: 0.10.0
libtpu: 0.0.40
codegen_flags: <defaults>
</compile_context>

<pallas_src>
import jax
import jax.numpy as jnp
from jax import lax
from jax.experimental import pallas as pl
from jax.experimental.pallas import tpu as pltpu

FEATURE_DIM = 768   # self.featureDim in the module
BN_EPS = 1e-5       # nn.BatchNorm1d default eps
LANE = 128          # TPU lane width


def intentbert_head_kernel(h_ref, gamma_ref, beta_ref, w_ref, b_ref,
                           logits_ref, emb_ref):
    """Fused CLS-select + BatchNorm1d (batch stats) + Linear classifier.

    h_ref     : [B, SB, D] first sublane-block of tokens (token 0 = CLS is row 0)
    gamma_ref : [1, D]     BN weight
    beta_ref  : [1, D]     BN bias
    w_ref     : [Cp, D]    classifier weight, native PyTorch layout, zero-padded to Cp=mult(128)
    b_ref     : [1, Cp]    classifier bias, zero-padded
    logits_ref: [B, Cp]    lane-dense padded logits
    emb_ref   : [B, D]     post-BN CLS embedding (returnEmbedding=True output)
    """
    x = h_ref[:, 0, :].astype(jnp.float32)                     # [B, D] CLS token only
    n = x.shape[0]
    inv_n = 1.0 / n                                             # static Python constant

    # BatchNorm1d, training mode, single-pass moments: var = E[x^2] - mu^2 (biased).
    s1 = jnp.sum(x, axis=0, keepdims=True)                      # [1, D]
    s2 = jnp.sum(x * x, axis=0, keepdims=True)                  # [1, D]
    mu = s1 * inv_n
    var = jnp.maximum(s2 * inv_n - mu * mu, 0.0)
    inv_std = lax.rsqrt(var + BN_EPS)

    # Fold gamma/inv_std/mu/beta into one scale+shift -> single FMA pass over [B, D].
    scale = gamma_ref[...] * inv_std                            # [1, D]
    shift = beta_ref[...] - mu * scale                          # [1, D]
    y = x * scale + shift                                       # [B, D]

    # Dropout(0.1): identity (inference semantics).  See TODO(synk) above.
    emb_ref[...] = y.astype(emb_ref.dtype)

    # Linear classifier on the MXU: contract D of y with D of the native [Cp, D] weight
    # (NT matmul) -- no transpose materialized anywhere.
    # TODO(synk): on v6e/v7x with large B/C, casting y and w to bfloat16 here (keeping
    #             preferred_element_type=f32) would roughly double MXU throughput; kept f32
    #             since this size is latency-bound and v5e has no bf16 vector paths.
    logits = lax.dot_general(
        y, w_ref[...],
        dimension_numbers=(((1,), (1,)), ((), ())),
        preferred_element_type=jnp.float32)                     # [B, Cp]
    logits_ref[...] = (logits + b_ref[...]).astype(logits_ref.dtype)


def prepare_classifier_params(cls_w, cls_b):
    """One-time init-side prep: zero-pad the class dim to a multiple of 128 lanes.

    cls_w: [C, D] (PyTorch nn.Linear layout, kept as-is), cls_b: [C]
    Returns (w_pad [Cp, D], b_pad [1, Cp]).
    """
    C, D = cls_w.shape
    Cp = ((C + LANE - 1) // LANE) * LANE
    w_pad = jnp.zeros((Cp, D), cls_w.dtype).at[:C, :].set(cls_w)
    b_pad = jnp.zeros((1, Cp), cls_b.dtype).at[0, :C].set(cls_b)
    return w_pad, b_pad


def intentbert_forward(last_hidden_state, bn_gamma, bn_beta, w_pad, b_pad,
                       cls_num, return_embedding=True):
    """JAX wrapper: single pallas_call; CLS slice fused via BlockSpec.

    last_hidden_state: [B, S, D] float32 — stand-in for the pretrained LM output.
    w_pad            : [Cp, D] padded classifier weight (from prepare_classifier_params)
    b_pad            : [1, Cp] padded classifier bias
    """
    B, S, D = last_hidden_state.shape
    Cp = w_pad.shape[0]
    seq_blk = min(8, S)                      # sublane-aligned block containing the CLS token

    gamma2 = bn_gamma.reshape(1, D)          # free metadata reshape
    beta2 = bn_beta.reshape(1, D)

    logits_pad, emb = pl.pallas_call(
        intentbert_head_kernel,
        grid=(1,),
        in_specs=[
            # Only the first seq_blk token rows are DMA'd from the [B, S, D] tensor.
            pl.BlockSpec((B, seq_blk, D), lambda i: (0, 0, 0)),
            pl.BlockSpec((1, D), lambda i: (0, 0)),
            pl.BlockSpec((1, D), lambda i: (0, 0)),
            pl.BlockSpec((Cp, D), lambda i: (0, 0)),
            pl.BlockSpec((1, Cp), lambda i: (0, 0)),
        ],
        out_specs=[
            pl.BlockSpec((B, Cp), lambda i: (0, 0)),   # lane-dense padded logits
            pl.BlockSpec((B, D), lambda i: (0, 0)),
        ],
        out_shape=[
            jax.ShapeDtypeStruct((B, Cp), jnp.float32),
            # NOTE: emb could be emitted in bfloat16 to halve the dominant HBM write on v7x;
            # kept at the input dtype to preserve the module's fp32 output semantics.
            jax.ShapeDtypeStruct((B, D), last_hidden_state.dtype),
        ],
        compiler_params=pltpu.CompilerParams(
            dimension_semantics=("arbitrary",)),
    )(last_hidden_state, gamma2, beta2, w_pad, b_pad)

    logits = logits_pad[:, :cls_num]         # drop zero-padded classes
    if return_embedding:
        return logits, emb
    return logits


def _reference_forward(last_hidden_state, bn_gamma, bn_beta, cls_w, cls_b):
    """Pure-JAX reference mirroring the PyTorch semantics (two-pass BN, [C, D] linear)."""
    x = last_hidden_state[:, 0, :]
    mu = x.mean(axis=0, keepdims=True)
    var = ((x - mu) ** 2).mean(axis=0, keepdims=True)            # biased, training mode
    y = (x - mu) / jnp.sqrt(var + BN_EPS) * bn_gamma[None, :] + bn_beta[None, :]
    logits = y @ cls_w.T + cls_b[None, :]
    return logits, y


if __name__ == "__main__":
    key = jax.random.PRNGKey(0)
    k_h, k_w, k_b, k_g, k_bt = jax.random.split(key, 5)

    B, S, D = 8, 16, FEATURE_DIM
    CLS_NUM = 8   # config['clsNumber']

    # Stand-in for the pretrained LM's last hidden state.
    last_hidden_state = jax.random.normal(k_h, (B, S, D), dtype=jnp.float32)

    # Deterministic synthetic parameters (shapes from module __init__); BN params made
    # non-trivial to exercise the scale/shift path.
    bn_gamma = 1.0 + 0.1 * jax.random.normal(k_g, (D,), dtype=jnp.float32)
    bn_beta = 0.1 * jax.random.normal(k_bt, (D,), dtype=jnp.float32)
    cls_w = 0.02 * jax.random.normal(k_w, (CLS_NUM, D), dtype=jnp.float32)
    cls_b = 0.01 * jax.random.normal(k_b, (CLS_NUM,), dtype=jnp.float32)

    # One-time init-side layout prep (pad class dim to 128 lanes; weight stays [C, D]).
    w_pad, b_pad = prepare_classifier_params(cls_w, cls_b)

    logits, emb = intentbert_forward(last_hidden_state, bn_gamma, bn_beta,
                                     w_pad, b_pad, CLS_NUM, return_embedding=True)
    jax.block_until_ready((logits, emb))

    ref_logits, ref_emb = _reference_forward(last_hidden_state, bn_gamma,
                                             bn_beta, cls_w, cls_b)
    assert logits.shape == (B, CLS_NUM)
    assert emb.shape == (B, D)
    assert jnp.allclose(logits, ref_logits, atol=1e-4, rtol=1e-4)
    assert jnp.allclose(emb, ref_emb, atol=1e-4, rtol=1e-4)

    print("KERNEL_OK")
</pallas_src>

<mosaic_0001>
module attributes {stable_mosaic.version = 11 : i64} {
  func.func @intentbert_head_kernel(%arg0: i32, %arg1: memref<8x8x768xf32, #tpu.memory_space<vmem>>, %arg2: memref<1x768xf32, #tpu.memory_space<vmem>>, %arg3: memref<1x768xf32, #tpu.memory_space<vmem>>, %arg4: memref<128x768xf32, #tpu.memory_space<vmem>>, %arg5: memref<1x128xf32, #tpu.memory_space<vmem>>, %arg6: memref<8x128xf32, #tpu.memory_space<vmem>>, %arg7: memref<8x768xf32, #tpu.memory_space<vmem>>) attributes {dimension_semantics = [#tpu.dimension_semantics<arbitrary>], iteration_bounds = array<i64: 1>, scalar_prefetch = 0 : i64, scratch_operands = 0 : i64, tpu.core_type = #tpu.core_type<tc>, window_params = [{transform_indices = @transform_0, window_bounds = array<i64: 8, 8, 768>}, {pipeline_mode = #tpu.pipeline_mode<synchronous>, transform_indices = @transform_1, window_bounds = array<i64: 1, 768>}, {pipeline_mode = #tpu.pipeline_mode<synchronous>, transform_indices = @transform_2, window_bounds = array<i64: 1, 768>}, {pipeline_mode = #tpu.pipeline_mode<synchronous>, transform_indices = @transform_3, window_bounds = array<i64: 128, 768>}, {pipeline_mode = #tpu.pipeline_mode<synchronous>, transform_indices = @transform_4, window_bounds = array<i64: 1, 128>}, {pipeline_mode = #tpu.pipeline_mode<synchronous>, transform_indices = @transform_5, window_bounds = array<i64: 8, 128>}, {pipeline_mode = #tpu.pipeline_mode<synchronous>, transform_indices = @transform_6, window_bounds = array<i64: 8, 768>}]} {
    %c0 = arith.constant 0 : index
    %c0_0 = arith.constant 0 : index
    %c0_1 = arith.constant 0 : index
    %0 = vector.load %arg1[%c0, %c0_0, %c0_1] : memref<8x8x768xf32, #tpu.memory_space<vmem>>, vector<8x1x768xf32>
    %1 = vector.shape_cast %0 : vector<8x1x768xf32> to vector<8x768xf32>
    %cst = arith.constant dense<0.000000e+00> : vector<768xf32>
    %2 = vector.multi_reduction <add>, %1, %cst [0] : vector<8x768xf32> to vector<768xf32>
    %3 = vector.shape_cast %2 : vector<768xf32> to vector<1x768xf32>
    %4 = arith.mulf %1, %1 : vector<8x768xf32>
    %cst_2 = arith.constant dense<0.000000e+00> : vector<768xf32>
    %5 = vector.multi_reduction <add>, %4, %cst_2 [0] : vector<8x768xf32> to vector<768xf32>
    %6 = vector.shape_cast %5 : vector<768xf32> to vector<1x768xf32>
    %cst_3 = arith.constant 1.250000e-01 : f32
    %7 = vector.broadcast %cst_3 : f32 to vector<1x768xf32>
    %8 = arith.mulf %3, %7 : vector<1x768xf32>
    %cst_4 = arith.constant 1.250000e-01 : f32
    %9 = vector.broadcast %cst_4 : f32 to vector<1x768xf32>
    %10 = arith.mulf %6, %9 : vector<1x768xf32>
    %11 = arith.mulf %8, %8 : vector<1x768xf32>
    %12 = arith.subf %10, %11 : vector<1x768xf32>
    %cst_5 = arith.constant 0.000000e+00 : f32
    %13 = vector.broadcast %cst_5 : f32 to vector<1x768xf32>
    %14 = arith.maximumf %12, %13 : vector<1x768xf32>
    %cst_6 = arith.constant 9.99999974E-6 : f32
    %15 = vector.broadcast %cst_6 : f32 to vector<1x768xf32>
    %16 = arith.addf %14, %15 : vector<1x768xf32>
    %17 = math.rsqrt %16 : vector<1x768xf32>
    %c0_7 = arith.constant 0 : index
    %c0_8 = arith.constant 0 : index
    %18 = vector.load %arg2[%c0_7, %c0_8] : memref<1x768xf32, #tpu.memory_space<vmem>>, vector<1x768xf32>
    %19 = arith.mulf %18, %17 : vector<1x768xf32>
    %c0_9 = arith.constant 0 : index
    %c0_10 = arith.constant 0 : index
    %20 = vector.load %arg3[%c0_9, %c0_10] : memref<1x768xf32, #tpu.memory_space<vmem>>, vector<1x768xf32>
    %21 = arith.mulf %8, %19 : vector<1x768xf32>
    %22 = arith.subf %20, %21 : vector<1x768xf32>
    %23 = vector.broadcast %19 : vector<1x768xf32> to vector<8x768xf32>
    %24 = arith.mulf %1, %23 : vector<8x768xf32>
    %25 = vector.broadcast %22 : vector<1x768xf32> to vector<8x768xf32>
    %26 = arith.addf %24, %25 : vector<8x768xf32>
    %c0_11 = arith.constant 0 : index
    %c0_12 = arith.constant 0 : index
    %27 = vector.load %arg7[%c0_11, %c0_12] : memref<8x768xf32, #tpu.memory_space<vmem>>, vector<8x768xf32>
    tpu.vector_store %arg7[%c0_11, %c0_12], %26 {strides = array<i32>} : memref<8x768xf32, #tpu.memory_space<vmem>>, vector<8x768xf32>,
    %c0_13 = arith.constant 0 : index
    %c0_14 = arith.constant 0 : index
    %28 = vector.load %arg4[%c0_13, %c0_14] : memref<128x768xf32, #tpu.memory_space<vmem>>, vector<128x768xf32>
    %cst_15 = arith.constant dense<0.000000e+00> : vector<8x128xf32>
    %29 = tpu.matmul %26, %28, %cst_15 {dimension_numbers = #tpu.dot_dimension_numbers<[1], [1], [0], [0], [0, 0, 1, 0], [], []>} : vector<8x768xf32>, vector<128x768xf32>, vector<8x128xf32> -> vector<8x128xf32>
    %c0_16 = arith.constant 0 : index
    %c0_17 = arith.constant 0 : index
    %30 = vector.load %arg5[%c0_16, %c0_17] : memref<1x128xf32, #tpu.memory_space<vmem>>, vector<1x128xf32>
    %31 = vector.broadcast %30 : vector<1x128xf32> to vector<8x128xf32>
    %32 = arith.addf %29, %31 : vector<8x128xf32>
    %c0_18 = arith.constant 0 : index
    %c0_19 = arith.constant 0 : index
    %33 = vector.load %arg6[%c0_18, %c0_19] : memref<8x128xf32, #tpu.memory_space<vmem>>, vector<8x128xf32>
    tpu.vector_store %arg6[%c0_18, %c0_19], %32 {strides = array<i32>} : memref<8x128xf32, #tpu.memory_space<vmem>>, vector<8x128xf32>,
    return
  }
  func.func @transform_0(%arg0: i32) -> (i32, i32, i32) {
    %c0_i32 = arith.constant 0 : i32
    %c0_i32_0 = arith.constant 0 : i32
    %c0_i32_1 = arith.constant 0 : i32
    %c0_i32_2 = arith.constant 0 : i32
    return %c0_i32, %c0_i32_0, %c0_i32_1 : i32, i32, i32
  }
  func.func @transform_1(%arg0: i32) -> (i32, i32) {
    %c0_i32 = arith.constant 0 : i32
    %c0_i32_0 = arith.constant 0 : i32
    %c0_i32_1 = arith.constant 0 : i32
    return %c0_i32, %c0_i32_0 : i32, i32
  }
  func.func @transform_2(%arg0: i32) -> (i32, i32) {
    %c0_i32 = arith.constant 0 : i32
    %c0_i32_0 = arith.constant 0 : i32
    %c0_i32_1 = arith.constant 0 : i32
    return %c0_i32, %c0_i32_0 : i32, i32
  }
  func.func @transform_3(%arg0: i32) -> (i32, i32) {
    %c0_i32 = arith.constant 0 : i32
    %c0_i32_0 = arith.constant 0 : i32
    %c0_i32_1 = arith.constant 0 : i32
    return %c0_i32, %c0_i32_0 : i32, i32
  }
  func.func @transform_4(%arg0: i32) -> (i32, i32) {
    %c0_i32 = arith.constant 0 : i32
    %c0_i32_0 = arith.constant 0 : i32
    %c0_i32_1 = arith.constant 0 : i32
    return %c0_i32, %c0_i32_0 : i32, i32
  }
  func.func @transform_5(%arg0: i32) -> (i32, i32) {
    %c0_i32 = arith.constant 0 : i32
    %c0_i32_0 = arith.constant 0 : i32
    %c0_i32_1 = arith.constant 0 : i32
    return %c0_i32, %c0_i32_0 : i32, i32
  }
  func.func @transform_6(%arg0: i32) -> (i32, i32) {
    %c0_i32 = arith.constant 0 : i32
    %c0_i32_0 = arith.constant 0 : i32
    %c0_i32_1 = arith.constant 0 : i32
    return %c0_i32, %c0_i32_0 : i32, i32
  }
}

</mosaic_0001>

<bundles_post_ra>
// kernel: tpu_custom_call.1
= control target key start
LH: loop header
LB: loop body
LE: loop exit
PB: predicated region body
PF: predicated region fallthrough
CT: control target
= control target key end

     0   :  { %12 = vsyncpa [#allocation3], 0  ;;  %s1905_s0 = inlined_call_operand.hbm [shape: f32[8,16,768], index: 0, kind: input, shape index: {}]   ;;  %s1906_s1 = inlined_call_operand.hbm [shape: f32[1,768], index: 1, kind: input, shape index: {}]   ;;  %s1907_s2 = inlined_call_operand.hbm [shape: f32[1,768], index: 2, kind: input, shape index: {}]   ;;  %s1908_s3 = inlined_call_operand.hbm [shape: f32[128,768], index: 3, kind: input, shape index: {}]   ;;  %s1909_s4 = inlined_call_operand.vmem [shape: f32[1,128], index: 4, kind: input, shape index: {}]   ;;  %s1910_s5 = inlined_call_operand.hbm [shape: f32[8,128], index: 5, kind: output, shape index: {0}]   ;;  %s1911_s6 = inlined_call_operand.hbm [shape: f32[8,768], index: 6, kind: output, shape index: {1}]  }
   0x1   :  { %13 = vsyncpa [#allocation6], 0 }
   0x2   :  { %14 = vsyncpa [#allocation9], 0 }
   0x3   :  { %15 = vsyncpa [#allocation4], 0 }
   0x4   :  { %16 = vsyncpa [#allocation12], 0  ;;  %s1604_s21 = smov [#allocation5]   ;;  %s1605_s23 = smov [#allocation2]  }
   0x5   :  { %s35_s22 = sshll.u32 %s1604_s21, 4  ;;  %s22_s24 = sshll.u32 %s1605_s23, 4  ;;  %s36_s22 = int_to_ptr.vmem [resolvable:$true] %s35_s22  ;;  %s23_s24 = int_to_ptr.vmem [resolvable:$true] %s22_s24 }
   0x6   :  { %s1482_s25 = scalar_lea.vmem %s36_s22, 96  ;;  %p1487_p1 = scmp.lt.s32.totalorder %s36_s22, %s36_s22 }
   0x7   :  { %p1483_p0 = scmp.ne.s32.totalorder %s36_s22, %s1482_s25  ;;  %p1488_p2 = scmp.lt.s32.totalorder %s1482_s25, %s1482_s25 }
   0x9   :  { %p1489_p3 = por %p1488_p2, %p1487_p1 }
   0xb   :  { %p1490_p4 = pnand %p1489_p3, %p1483_p0 }
   0xd   :  { %1493 = shalt.err (!%p1490_p4)
}
   0xe   :  { %38 = dma.hbm_to_vmem [thread:$0]  %s1906_s1, 96, %s36_s22, [#allocation6]  }
   0xf   :  { %s1502_s28 = scalar_lea.vmem %s23_s24, 6144  ;;  %p1507_p6 = scmp.lt.s32.totalorder %s23_s24, %s23_s24 }
  0x10   :  { %p1503_p5 = scmp.ne.s32.totalorder %s23_s24, %s1502_s28  ;;  %p1508_p7 = scmp.lt.s32.totalorder %s1502_s28, %s1502_s28 }
  0x12   :  { %p1509_p8 = por %p1508_p7, %p1507_p6 }
  0x14   :  { %p1510_p9 = pnand %p1509_p8, %p1503_p5 }
  0x16   :  { %1513 = shalt.err (!%p1510_p9)
}
  0x17   :  { %s1606_s29 = smov 1536   ;;  %s1607_s30 = smov 768  }
  0x18   :  { %s1608_s7 = smov 48   ;;  %s1609_s10 = smov [#allocation7]  }
  0x19   :  { %28 = dma.hbm_to_vmem [thread:$0]  %s1905_s0, 6144, %s23_s24, [#allocation3], %s1606_s29, %s1607_s30, %s1608_s7  }
  0x1a   :  { %s45_s11 = sshll.u32 %s1609_s10, 4  ;;  %s1610_s12 = smov [#allocation8]   ;;  %s46_s11 = int_to_ptr.vmem [resolvable:$true] %s45_s11 }
  0x1b   :  { %s54_s13 = sshll.u32 %s1610_s12, 4  ;;  %s1522_s1 = scalar_lea.vmem %s46_s11, 96  ;;  %s55_s13 = int_to_ptr.vmem [resolvable:$true] %s54_s13 }
  0x1c   :  { %p1523_p10 = scmp.ne.s32.totalorder %s46_s11, %s1522_s1  ;;  %p1527_p11 = scmp.lt.s32.totalorder %s46_s11, %s46_s11 }
  0x1d   :  { %p1528_p12 = scmp.lt.s32.totalorder %s1522_s1, %s1522_s1 }
  0x1f   :  { %p1529_p13 = por %p1528_p12, %p1527_p11 }
  0x21   :  { %p1530_p0 = pnand %p1529_p13, %p1523_p10 }
  0x23   :  { %1533 = shalt.err (!%p1530_p0)
}
  0x24   :  { %48 = dma.hbm_to_vmem [thread:$0]  %s1907_s2, 96, %s46_s11, [#allocation6]  }
  0x25   :  { %s1542_s16 = scalar_lea.vmem %s55_s13, 12288  ;;  %p1547_p2 = scmp.lt.s32.totalorder %s55_s13, %s55_s13 }
  0x26   :  { %p1543_p1 = scmp.ne.s32.totalorder %s55_s13, %s1542_s16  ;;  %p1548_p3 = scmp.lt.s32.totalorder %s1542_s16, %s1542_s16 }
  0x28   :  { %p1549_p4 = por %p1548_p3, %p1547_p2 }
  0x2a   :  { %p1550_p5 = pnand %p1549_p4, %p1543_p1 }
  0x2c   :  { %1553 = shalt.err (!%p1550_p5)
}
  0x2d   :  { %60 = dma.hbm_to_vmem [thread:$0]  %s1908_s3, 12288, %s55_s13, [#allocation9], %s1607_s30, %s1607_s30, %s1608_s7  }
  0x2e   :  { %1594 = dma.done.wait [#allocation3], 6144  }
  0x2f   :  { %1595 = vsyncadd [#allocation3], 4294961152 }
  0x30   :  { %1596 = dma.done.wait [#allocation6], 192  }
  0x31   :  { %1597 = vsyncadd [#allocation6], 4294967104 }
  0x32   :  { %1598 = dma.done.wait [#allocation9], 12288  }
  0x33   :  { %1599 = vsyncadd [#allocation9], 4294955008  ;;  %v1197_v0 = vld [vmem:[#allocation8 + $0x2d8] sm:$0xff]  ;;  %v1196_v1 = vld [vmem:[#allocation8 + $0x2d0] sm:$0xff]  ;;  %v1611_v22 = vmov 1966171168   ;;  %v125_v24 = vlaneseq }
  0x34   :  { %v1199_v2 = vld [vmem:[#allocation8 + $0x2e8] sm:$0xff]  ;;  %1209 = vmatprep.subr.mxu0 %v1197_v0  ;;  %v1198_v4 = vld [vmem:[#allocation8 + $0x2e0] sm:$0xff]  ;;  %v1193_v5 = vld [vmem:[#allocation8 + $0x2b8] sm:$0xff]  ;;  %v123_v23 = vunpack.c.l.s4 %v1611_v22  ;;  %s1612_s2 = smov [#allocation11]  }
  0x35   :  { %1279 = vmatprep.subr.mxu1 %v1199_v2  ;;  %v1191_v3 = vld [vmem:[#allocation8 + $0x2a8] sm:$0xff]  ;;  %1210 = vmatpush1.xpose.msra.mxu0 %v1196_v1  ;;  %v1190_v6 = vld [vmem:[#allocation8 + $0x2a0] sm:$0xff]  ;;  %v1192_v7 = vld [vmem:[#allocation8 + $0x2b0] sm:$0xff]  ;;  %v1661_v30 = vshrl.u32 %v125_v24, 7  ;;  %s1436_s3 = sshll.u32 %s1612_s2, 4  ;;  %s1437_s3 = int_to_ptr.vmem [resolvable:$true] %s1436_s3 }
  0x36   :  { %1280 = vmatpush1.xpose.msra.mxu1 %v1198_v4  ;;  %1211 = vmatprep.subr.mxu0 %v1191_v3  ;;  %v1185_v8 = vld [vmem:[#allocation8 + $0x278] sm:$0xff]  ;;  %v1187_v9 = vld [vmem:[#allocation8 + $0x288] sm:$0xff]  ;;  %v1184_v10 = vld [vmem:[#allocation8 + $0x270] sm:$0xff]  ;;  %v124_v29 = vunpack.c.0.s8 %v123_v23  ;;  %s1554_s18 = scalar_lea.vmem %s1437_s3, 768  ;;  %p1559_p7 = scmp.lt.s32.totalorder %s1437_s3, %s1437_s3 }
  0x37   :  { %1281 = vmatprep.subr.mxu1 %v1193_v5  ;;  %v1186_v11 = vld [vmem:[#allocation8 + $0x280] sm:$0xff]  ;;  %v1179_v12 = vld [vmem:[#allocation8 + $0x248] sm:$0xff]  ;;  %v1181_v13 = vld [vmem:[#allocation8 + $0x258] sm:$0xff]  ;;  %p1555_p6 = scmp.ne.s32.totalorder %s1437_s3, %s1554_s18  ;;  %p1560_p8 = scmp.lt.s32.totalorder %s1554_s18, %s1554_s18 }
  0x38   :  { %v1178_v14 = vld [vmem:[#allocation8 + $0x240] sm:$0xff]  ;;  %v1180_v15 = vld [vmem:[#allocation8 + $0x250] sm:$0xff]  ;;  %v1173_v16 = vld [vmem:[#allocation8 + $0x218] sm:$0xff]  ;;  %v1670_v46 = vsub.s32 %v124_v29, %v1661_v30 }
  0x39   :  { %1212 = vmatpush1.xpose.msra.mxu0 %v1190_v6  ;;  %v1175_v17 = vld [vmem:[#allocation8 + $0x228] sm:$0xff]  ;;  %v1172_v18 = vld [vmem:[#allocation8 + $0x210] sm:$0xff]  ;;  %v1174_v19 = vld [vmem:[#allocation8 + $0x220] sm:$0xff]  ;;  %p1561_p9 = por %p1560_p8, %p1559_p7 }
  0x3a   :  { %1282 = vmatpush1.xpose.msra.mxu1 %v1192_v7  ;;  %1213 = vmatprep.subr.mxu0 %v1185_v8  ;;  %v1167_v20 = vld [vmem:[#allocation8 + $0x1e8] sm:$0xff]  ;;  %v1169_v21 = vld [vmem:[#allocation8 + $0x1f8] sm:$0xff]  ;;  %v1166_v25 = vld [vmem:[#allocation8 + $0x1e0] sm:$0xff] }
  0x3b   :  { %1283 = vmatprep.subr.mxu1 %v1187_v9  ;;  %v1168_v26 = vld [vmem:[#allocation8 + $0x1f0] sm:$0xff]  ;;  %v1161_v27 = vld [vmem:[#allocation8 + $0x1b8] sm:$0xff]  ;;  %v1163_v28 = vld [vmem:[#allocation8 + $0x1c8] sm:$0xff]  ;;  %p1562_p10 = pnand %p1561_p9, %p1555_p6 }
  0x3c   :  { %v1160_v31 = vld [vmem:[#allocation8 + $0x1b0] sm:$0xff]  ;;  %v1162_v32 = vld [vmem:[#allocation8 + $0x1c0] sm:$0xff]  ;;  %v1155_v35 = vld [vmem:[#allocation8 + $0x188] sm:$0xff] }
  0x3d   :  { %1214 = vmatpush1.xpose.msra.mxu0 %v1184_v10  ;;  %v75_v33 = vld [vmem:[#allocation2] ss:$8 sm:$0xf] }
  0x3e   :  { %1284 = vmatpush1.xpose.msra.mxu1 %v1186_v11  ;;  %1215 = vmatprep.subr.mxu0 %v1179_v12  ;;  %v76_v34 = vld [vmem:[#allocation2] ss:$8 sm:$0x30]  ;;  %v80_v39 = vld [vmem:[#allocation2 + $0x30] ss:$8 sm:$0x30] }
  0x3f   :  { %1285 = vmatprep.subr.mxu1 %v1181_v13  ;;  %v1157_v36 = vld [vmem:[#allocation8 + $0x198] sm:$0xff]  ;;  %v1663_v37 = vor.u32 %v76_v34, %v75_v33  ;;  %v88_v45 = vld [vmem:[#allocation2 + $0x90] ss:$8 sm:$0x30]  ;;  %v1156_v48 = vld [vmem:[#allocation8 + $0x190] sm:$0xff] }
  0x40   :  { %v79_v38 = vld [vmem:[#allocation2 + $0x30] ss:$8 sm:$0xf] }
  0x41   :  { %1216 = vmatpush1.xpose.msra.mxu0 %v1178_v14  ;;  %v1665_v40 = vor.u32 %v80_v39, %v79_v38  ;;  %v83_v41 = vld [vmem:[#allocation2 + $0x60] ss:$8 sm:$0xf]  ;;  %v1708_v24 = vmul.f32 %v1663_v37, %v1663_v37 }
  0x42   :  { %1286 = vmatpush1.xpose.msra.mxu1 %v1180_v15  ;;  %1217 = vmatprep.subr.mxu0 %v1173_v16  ;;  %v84_v42 = vld [vmem:[#allocation2 + $0x60] ss:$8 sm:$0x30]  ;;  %v1154_v47 = vld [vmem:[#allocation8 + $0x180] sm:$0xff]  ;;  %v1151_v55 = vld [vmem:[#allocation8 + $0x168] sm:$0xff] }
  0x43   :  { %1287 = vmatprep.subr.mxu1 %v1175_v17  ;;  %v1667_v43 = vor.u32 %v84_v42, %v83_v41  ;;  %v87_v44 = vld [vmem:[#allocation2 + $0x90] ss:$8 sm:$0xf]  ;;  %v114_v52 = vcombine.low %v1663_v37, %v1665_v40  ;;  %v115_v53 = vcombine.high %v1663_v37, %v1665_v40 }
  0x44   :  { %v1672_v49 = vor.u32 %v88_v45, %v87_v44  ;;  %v91_v50 = vld [vmem:[#allocation2 + $0xc0] ss:$8 sm:$0xf] }
  0x45   :  { %1218 = vmatpush1.xpose.msra.mxu0 %v1172_v18  ;;  %v92_v51 = vld [vmem:[#allocation2 + $0xc0] ss:$8 sm:$0x30]  ;;  %v96_v58 = vld [vmem:[#allocation2 + $0xf0] ss:$8 sm:$0x30]  ;;  %v128_v3 = vrot.slane %v114_v52, %v1670_v46  ;;  %v135_v4 = vrot.slane %v115_v53, %v1670_v46  ;;  %v1720_v41 = vmul.f32 %v1667_v43, %v1667_v43 }
  0x46   :  { %1288 = vmatpush1.xpose.msra.mxu1 %v1174_v19  ;;  %1219 = vmatprep.subr.mxu0 %v1167_v20  ;;  %v1149_v54 = vld [vmem:[#allocation8 + $0x158] sm:$0xff]  ;;  %v1678_v56 = vor.u32 %v92_v51, %v91_v50  ;;  %v116_v62 = vcombine.low %v1667_v43, %v1672_v49  ;;  %v117_v63 = vcombine.high %v1667_v43, %v1672_v49  ;;  %v104_v2 = vld [vmem:[#allocation2 + $0x150] ss:$8 sm:$0x30]  ;;  %v1148_v10 = vld [vmem:[#allocation8 + $0x150] sm:$0xff] }
  0x47   :  { %1289 = vmatprep.subr.mxu1 %v1169_v21  ;;  %v95_v57 = vld [vmem:[#allocation2 + $0xf0] ss:$8 sm:$0xf] }
  0x48   :  { %v1680_v59 = vor.u32 %v96_v58, %v95_v57  ;;  %v99_v60 = vld [vmem:[#allocation2 + $0x120] ss:$8 sm:$0xf]  ;;  %v142_v8 = vrot.slane %v116_v62, %v1670_v46  ;;  %v149_v9 = vrot.slane %v117_v63, %v1670_v46  ;;  %v1732_v50 = vmul.f32 %v1678_v56, %v1678_v56 }
  0x49   :  { %1220 = vmatpush1.xpose.msra.mxu0 %v1166_v25  ;;  %v100_v61 = vld [vmem:[#allocation2 + $0x120] ss:$8 sm:$0x30]  ;;  %v1150_v11 = vld [vmem:[#allocation8 + $0x160] sm:$0xff]  ;;  %v1143_v15 = vld [vmem:[#allocation8 + $0x128] sm:$0xff] }
  0x4a   :  { %1290 = vmatpush1.xpose.msra.mxu1 %v1168_v26  ;;  %1221 = vmatprep.subr.mxu0 %v1161_v27  ;;  %v1686_v0 = vor.u32 %v100_v61, %v99_v60  ;;  %v103_v1 = vld [vmem:[#allocation2 + $0x150] ss:$8 sm:$0xf]  ;;  %v118_v6 = vcombine.low %v1678_v56, %v1680_v59  ;;  %v119_v7 = vcombine.high %v1678_v56, %v1680_v59 }
  0x4b   :  { %1291 = vmatprep.subr.mxu1 %v1163_v28  ;;  %v1690_v5 = vor.u32 %v104_v2, %v103_v1  ;;  %v1145_v16 = vld [vmem:[#allocation8 + $0x138] sm:$0xff]  ;;  %v178_v18 = vcombine.low %v128_v3, %v142_v8  ;;  %v179_v19 = vcombine.high %v128_v3, %v142_v8  ;;  %v180_v20 = vcombine.low %v135_v4, %v149_v9  ;;  %v1142_v28 = vld [vmem:[#allocation8 + $0x120] sm:$0xff]  ;;  %v1144_v29 = vld [vmem:[#allocation8 + $0x130] sm:$0xff] }
  0x4c   :  { %v156_v14 = vrot.slane %v118_v6, %v1670_v46  ;;  %v163_v17 = vrot.slane %v119_v7, %v1670_v46  ;;  %v181_v23 = vcombine.high %v135_v4, %v149_v9  ;;  %v1714_v27 = vmul.f32 %v1665_v40, %v1665_v40  ;;  %v1137_v34 = vld [vmem:[#allocation8 + $0xf8] sm:$0xff]  ;;  %v1136_v52 = vld [vmem:[#allocation8 + $0xf0] sm:$0xff]  ;;  %v1138_v53 = vld [vmem:[#allocation8 + $0x100] sm:$0xff] }
  0x4d   :  { %1222 = vmatpush1.xpose.msra.mxu0 %v1160_v31  ;;  %v120_v12 = vcombine.low %v1686_v0, %v1690_v5  ;;  %v121_v13 = vcombine.high %v1686_v0, %v1690_v5  ;;  %v192_v25 = vrot.slane %v178_v18, %v1670_v46  ;;  %v199_v26 = vrot.slane %v180_v20, %v1670_v46  ;;  %v1131_v58 = vld [vmem:[#allocation8 + $0xc8] sm:$0xff]  ;;  %v1133_v60 = vld [vmem:[#allocation8 + $0xd8] sm:$0xff] }
  0x4e   :  { %1292 = vmatpush1.xpose.msra.mxu1 %v1162_v32  ;;  %1223 = vmatprep.subr.mxu0 %v1155_v35  ;;  %v1139_v35 = vld [vmem:[#allocation8 + $0x108] sm:$0xff]  ;;  %v206_v38 = vrot.slane %v179_v19, %v1670_v46  ;;  %v213_v39 = vrot.slane %v181_v23, %v1670_v46  ;;  %v1736_v51 = vmul.f32 %v1680_v59, %v1680_v59 }
  0x4f   :  { %1293 = vmatprep.subr.mxu1 %v1157_v36  ;;  %v170_v21 = vrot.slane %v120_v12, %v1670_v46  ;;  %v177_v22 = vrot.slane %v121_v13, %v1670_v46  ;;  %v1740_v1 = vmul.f32 %v1686_v0, %v1686_v0  ;;  %v1744_v6 = vmul.f32 %v1690_v5, %v1690_v5  ;;  %v1132_v12 = vld [vmem:[#allocation8 + $0xd0] sm:$0xff] }
  0x51   :  { %1224 = vmatpush1.xpose.msra.mxu0 %v1154_v47  ;;  %v182_v31 = vcombine.low %v156_v14, %v170_v21  ;;  %v183_v32 = vcombine.high %v156_v14, %v170_v21  ;;  %v184_v33 = vcombine.low %v163_v17, %v177_v22  ;;  %v185_v36 = vcombine.high %v163_v17, %v177_v22  ;;  %v1127_v17 = vld [vmem:[#allocation8 + $0xa8] sm:$0xff] }
  0x52   :  { %1294 = vmatpush1.xpose.msra.mxu1 %v1156_v48  ;;  %1225 = vmatprep.subr.mxu0 %v1149_v54  ;;  %v1727_v47 = vmul.f32 %v1672_v49, %v1672_v49  ;;  %v307_v21 = vcombine.high %v1708_v24, %v1714_v27 }
  0x53   :  { %1295 = vmatprep.subr.mxu1 %v1151_v55  ;;  %v220_v42 = vrot.slane %v182_v31, %v1670_v46  ;;  %v227_v44 = vrot.slane %v184_v33, %v1670_v46  ;;  %v234_v45 = vrot.slane %v183_v32, %v1670_v46  ;;  %v241_v48 = vrot.slane %v185_v36, %v1670_v46  ;;  %v1124_v33 = vld [vmem:[#allocation8 + $0x90] sm:$0xff] }
  0x54   :  { %v309_v31 = vcombine.high %v1720_v41, %v1727_v47  ;;  %v310_v32 = vcombine.low %v1732_v50, %v1736_v51 }
  0x55   :  { %1226 = vmatpush1.xpose.msra.mxu0 %v1148_v10  ;;  %v242_v54 = vcombine.low %v192_v25, %v220_v42  ;;  %v243_v55 = vcombine.high %v192_v25, %v220_v42  ;;  %v244_v57 = vcombine.low %v199_v26, %v227_v44  ;;  %v245_v61 = vcombine.low %v206_v38, %v234_v45 }
  0x56   :  { %1296 = vmatpush1.xpose.msra.mxu1 %v1150_v11  ;;  %1227 = vmatprep.subr.mxu0 %v1143_v15  ;;  %v246_v62 = vcombine.high %v206_v38, %v234_v45  ;;  %v247_v63 = vcombine.low %v213_v39, %v241_v48  ;;  %v306_v10 = vcombine.low %v1708_v24, %v1714_v27  ;;  %v1130_v11 = vld [vmem:[#allocation8 + $0xc0] sm:$0xff]  ;;  %v1119_v38 = vld [vmem:[#allocation8 + $0x68] sm:$0xff]  ;;  %v1121_v39 = vld [vmem:[#allocation8 + $0x78] sm:$0xff] }
  0x57   :  { %1297 = vmatprep.subr.mxu1 %v1145_v16  ;;  %v254_v2 = vrot.slane %v242_v54, 4  ;;  %v266_v3 = vrot.slane %v243_v55, 4  ;;  %v278_v4 = vrot.slane %v244_v57, 4  ;;  %v260_v7 = vrot.slane %v245_v61, 4  ;;  %v1125_v16 = vld [vmem:[#allocation8 + $0x98] sm:$0xff]  ;;  %v1126_v24 = vld [vmem:[#allocation8 + $0xa0] sm:$0xff] }
  0x58   :  { %v272_v8 = vrot.slane %v246_v62, 4  ;;  %v284_v9 = vrot.slane %v247_v63, 4  ;;  %v308_v26 = vcombine.low %v1720_v41, %v1727_v47  ;;  %v311_v44 = vcombine.high %v1732_v50, %v1736_v51  ;;  %v1118_v51 = vld [vmem:[#allocation8 + $0x60] sm:$0xff] }
  0x59   :  { %1228 = vmatpush1.xpose.msra.mxu0 %v1142_v28  ;;  %v255_v13 = vadd.f32 %v254_v2, %v242_v54  ;;  %v267_v14 = vadd.f32 %v266_v3, %v243_v55  ;;  %v279_v15 = vadd.f32 %v278_v4, %v244_v57  ;;  %v261_v18 = vadd.f32 %v260_v7, %v245_v61 }
  0x5a   :  { %1298 = vmatpush1.xpose.msra.mxu1 %v1144_v29  ;;  %1229 = vmatprep.subr.mxu0 %v1137_v34  ;;  %v273_v19 = vadd.f32 %v272_v8, %v246_v62  ;;  %v285_v20 = vadd.f32 %v284_v9, %v247_v63  ;;  %v312_v41 = vcombine.low %v1740_v1, %v1744_v6  ;;  %v1113_v62 = vld [vmem:[#allocation8 + $0x38] sm:$0xff]  ;;  %v1115_v63 = vld [vmem:[#allocation8 + $0x48] sm:$0xff] }
  0x5b   :  { %1299 = vmatprep.subr.mxu1 %v1139_v35  ;;  %v256_v22 = vrot.slane %v255_v13, 2  ;;  %v268_v23 = vrot.slane %v267_v14, 2  ;;  %v280_v25 = vrot.slane %v279_v15, 2  ;;  %v262_v28 = vrot.slane %v261_v18, 2 }
  0x5c   :  { %v274_v29 = vrot.slane %v273_v19, 2  ;;  %v286_v36 = vrot.slane %v285_v20, 2  ;;  %v313_v45 = vcombine.high %v1740_v1, %v1744_v6  ;;  %v327_v57 = vrot.slane %v307_v21, %v1670_v46  ;;  %v1109_v21 = vld [vmem:[#allocation8 + $0x18] sm:$0xff] }
  0x5d   :  { %1230 = vmatpush1.xpose.msra.mxu0 %v1136_v52  ;;  %v257_v27 = vadd.f32 %v256_v22, %v255_v13  ;;  %v269_v34 = vadd.f32 %v268_v23, %v267_v14  ;;  %v281_v35 = vadd.f32 %v280_v25, %v279_v15  ;;  %v263_v42 = vadd.f32 %v262_v28, %v261_v18  ;;  %v1112_v14 = vld [vmem:[#allocation8 + $0x30] sm:$0xff]  ;;  %v1114_v15 = vld [vmem:[#allocation8 + $0x40] sm:$0xff] }
  0x5e   :  { %1300 = vmatpush1.xpose.msra.mxu1 %v1138_v53  ;;  %1231 = vmatprep.subr.mxu0 %v1131_v58  ;;  %v320_v52 = vrot.slane %v306_v10, %v1670_v46  ;;  %v334_v53 = vrot.slane %v308_v26, %v1670_v46  ;;  %v275_v54 = vadd.f32 %v274_v29, %v273_v19  ;;  %v1120_v58 = vld [vmem:[#allocation8 + $0x70] sm:$0xff] }
  0x5f   :  { %1301 = vmatprep.subr.mxu1 %v1133_v60  ;;  %v258_v47 = vrot.slane %v257_v27, 1  ;;  %v270_v48 = vrot.slane %v269_v34, 1  ;;  %v282_v55 = vrot.slane %v281_v35, 1  ;;  %v341_v50 = vrot.slane %v309_v31, %v1670_v46 }
  0x60   :  { %v287_v60 = vadd.f32 %v286_v36, %v285_v20  ;;  %v348_v61 = vrot.slane %v310_v32, %v1670_v46  ;;  %v264_v2 = vrot.slane %v263_v42, 1  ;;  %v355_v4 = vrot.slane %v311_v44, %v1670_v46  ;;  %v1107_v20 = vld [vmem:[#allocation8 + $0x8] sm:$0xff] }
  0x61   :  { %1232 = vmatpush1.xpose.msra.mxu0 %v1130_v11  ;;  %v259_v1 = vadd.f32 %v258_v47, %v257_v27  ;;  %v271_v3 = vadd.f32 %v270_v48, %v269_v34  ;;  %v362_v6 = vrot.slane %v312_v41, %v1670_v46  ;;  %v369_v7 = vrot.slane %v313_v45, %v1670_v46  ;;  %v1106_v34 = vld [vmem:[#allocation8] sm:$0xff]  ;;  %v1201_v48 = vld [vmem:[#allocation8 + $0x2f8] sm:$0xff] }
  0x62   :  { %1302 = vmatpush1.xpose.msra.mxu1 %v1132_v12  ;;  %1233 = vmatprep.subr.mxu0 %v1125_v16  ;;  %v370_v8 = vcombine.low %v320_v52, %v334_v53  ;;  %v371_v9 = vcombine.high %v320_v52, %v334_v53  ;;  %v276_v10 = vrot.slane %v275_v54, 1  ;;  %v283_v11 = vadd.f32 %v282_v55, %v281_v35 }
  0x63   :  { %1303 = vmatprep.subr.mxu1 %v1127_v17  ;;  %v372_v12 = vcombine.low %v327_v57, %v341_v50  ;;  %v373_v13 = vcombine.high %v327_v57, %v341_v50  ;;  %v288_v16 = vrot.slane %v287_v60, 1  ;;  %v374_v17 = vcombine.low %v348_v61, %v362_v6 }
  0x64   :  { %v375_v18 = vcombine.high %v348_v61, %v362_v6  ;;  %v376_v19 = vcombine.low %v355_v4, %v369_v7  ;;  %v377_v22 = vcombine.high %v355_v4, %v369_v7  ;;  %v384_v23 = vrot.slane %v370_v8, %v1670_v46 }
  0x65   :  { %1234 = vmatpush1.xpose.msra.mxu0 %v1124_v33  ;;  %v391_v25 = vrot.slane %v372_v12, %v1670_v46  ;;  %v398_v26 = vrot.slane %v371_v9, %v1670_v46  ;;  %v405_v28 = vrot.slane %v373_v13, %v1670_v46  ;;  %v412_v29 = vrot.slane %v374_v17, %v1670_v46 }
  0x66   :  { %1304 = vmatpush1.xpose.msra.mxu1 %v1126_v24  ;;  %1235 = vmatprep.subr.mxu0 %v1119_v38  ;;  %v419_v31 = vrot.slane %v376_v19, %v1670_v46  ;;  %v426_v32 = vrot.slane %v375_v18, %v1670_v46  ;;  %v265_v33 = vadd.f32 %v264_v2, %v263_v42  ;;  %v1778_v57 = vmul.f32 0.125, %v259_v1 }
  0x67   :  { %1305 = vmatprep.subr.mxu1 %v1121_v39  ;;  %v277_v24 = vadd.f32 %v276_v10, %v275_v54  ;;  %v433_v27 = vrot.slane %v377_v22, %v1670_v46  ;;  %v434_v35 = vcombine.low %v384_v23, %v412_v29  ;;  %v435_v36 = vcombine.high %v384_v23, %v412_v29  ;;  %v1108_v39 = vld [vmem:[#allocation8 + $0x10] sm:$0xff] }
  0x68   :  { %v436_v38 = vcombine.low %v391_v25, %v419_v31  ;;  %v289_v44 = vadd.f32 %v288_v16, %v287_v60  ;;  %v437_v41 = vcombine.low %v398_v26, %v426_v32  ;;  %v438_v45 = vcombine.high %v398_v26, %v426_v32 }
  0x69   :  { %1236 = vmatpush1.xpose.msra.mxu0 %v1118_v51  ;;  %v439_v47 = vcombine.low %v405_v28, %v433_v27  ;;  %v446_v52 = vrot.slane %v434_v35, 4  ;;  %v458_v53 = vrot.slane %v435_v36, 4  ;;  %v1780_v51 = vmul.f32 0.125, %v265_v33 }
  0x6a   :  { %1306 = vmatpush1.xpose.msra.mxu1 %v1120_v58  ;;  %1237 = vmatprep.subr.mxu0 %v1113_v62  ;;  %v470_v55 = vrot.slane %v436_v38, 4  ;;  %v452_v42 = vrot.slane %v437_v41, 4  ;;  %v464_v54 = vrot.slane %v438_v45, 4  ;;  %v1782_v60 = vmul.f32 0.125, %v271_v3 }
  0x6b   :  { %1307 = vmatprep.subr.mxu1 %v1115_v63  ;;  %v476_v50 = vrot.slane %v439_v47, 4  ;;  %v447_v58 = vadd.f32 %v446_v52, %v434_v35  ;;  %v459_v61 = vadd.f32 %v458_v53, %v435_v36  ;;  %v1784_v6 = vmul.f32 0.125, %v277_v24 }
  0x6c   :  { %v471_v62 = vadd.f32 %v470_v55, %v436_v38  ;;  %v453_v63 = vadd.f32 %v452_v42, %v437_v41  ;;  %v465_v2 = vadd.f32 %v464_v54, %v438_v45  ;;  %v1786_v9 = vmul.f32 0.125, %v283_v11 }
  0x6d   :  { %1238 = vmatpush1.xpose.msra.mxu0 %v1112_v14  ;;  %v477_v4 = vadd.f32 %v476_v50, %v439_v47  ;;  %v448_v1 = vrot.slane %v447_v58, 2  ;;  %v460_v7 = vrot.slane %v459_v61, 2  ;;  %v1788_v14 = vmul.f32 0.125, %v289_v44 }
  0x6e   :  { %1308 = vmatpush1.xpose.msra.mxu1 %v1114_v15  ;;  %1239 = vmatprep.subr.mxu0 %v1107_v20  ;;  %v472_v8 = vrot.slane %v471_v62, 2  ;;  %v454_v10 = vrot.slane %v453_v63, 2  ;;  %v466_v12 = vrot.slane %v465_v2, 2  ;;  %v494_v17 = vmul.f32 %v1778_v57, %v1778_v57 }
  0x6f   :  { %1309 = vmatprep.subr.mxu1 %v1109_v21  ;;  %v478_v13 = vrot.slane %v477_v4, 2  ;;  %v449_v15 = vadd.f32 %v448_v1, %v447_v58  ;;  %v461_v16 = vadd.f32 %v460_v7, %v459_v61  ;;  %v495_v21 = vmul.f32 %v1780_v51, %v1780_v51 }
  0x70   :  { %v473_v3 = vadd.f32 %v472_v8, %v471_v62  ;;  %v455_v18 = vadd.f32 %v454_v10, %v453_v63  ;;  %v467_v19 = vadd.f32 %v466_v12, %v465_v2  ;;  %v496_v25 = vmul.f32 %v1782_v60, %v1782_v60 }
  0x71   :  { %1240 = vmatpush1.xpose.msra.mxu0 %v1106_v34  ;;  %v479_v20 = vadd.f32 %v478_v13, %v477_v4  ;;  %v450_v22 = vrot.slane %v449_v15, 1  ;;  %v462_v11 = vrot.slane %v461_v16, 1  ;;  %v497_v31 = vmul.f32 %v1784_v6, %v1784_v6 }
  0x72   :  { %1310 = vmatpush1.xpose.msra.mxu1 %v1108_v39  ;;  %1349 = vmatprep.subr.mxu0 %v1201_v48  ;;  %v474_v23 = vrot.slane %v473_v3, 1  ;;  %v456_v26 = vrot.slane %v455_v18, 1  ;;  %v468_v28 = vrot.slane %v467_v19, 1  ;;  %v498_v27 = vmul.f32 %v1786_v9, %v1786_v9 }
  0x73   :  { %v480_v29 = vrot.slane %v479_v20, 1  ;;  %v451_v32 = vadd.f32 %v450_v22, %v449_v15  ;;  %v463_v33 = vadd.f32 %v462_v11, %v461_v16  ;;  %v499_v38 = vmul.f32 %v1788_v14, %v1788_v14 }
  0x74   :  { %v475_v24 = vadd.f32 %v474_v23, %v473_v3  ;;  %v457_v34 = vadd.f32 %v456_v26, %v455_v18  ;;  %v469_v35 = vadd.f32 %v468_v28, %v467_v19 }
  0x75   :  { %v481_v36 = vadd.f32 %v480_v29, %v479_v20  ;;  %v488_v39 = vmul.f32 0.125, %v451_v32  ;;  %v490_v44 = vmul.f32 0.125, %v463_v33  ;;  %v577_v32 = vsub.s32 0, %v1661_v30 }
  0x76   :  { %v492_v41 = vmul.f32 0.125, %v475_v24  ;;  %v489_v45 = vmul.f32 0.125, %v457_v34  ;;  %v491_v47 = vmul.f32 0.125, %v469_v35  ;;  %v581_v24 = vsub.s32 1, %v1661_v30 }
  0x77   :  { %v493_v48 = vmul.f32 0.125, %v481_v36  ;;  %v500_v52 = vsub.f32 %v488_v39, %v494_v17  ;;  %v502_v53 = vsub.f32 %v490_v44, %v496_v25  ;;  %v589_v34 = vsub.s32 3, %v1661_v30 }
  0x78   :  { %v504_v55 = vsub.f32 %v492_v41, %v498_v27  ;;  %v501_v42 = vsub.f32 %v489_v45, %v495_v21  ;;  %v503_v54 = vsub.f32 %v491_v47, %v497_v31  ;;  %v524_v31 = vld [vmem:[#allocation5] sm:$0x3f]  ;;  %v585_v27 = vsub.s32 2, %v1661_v30 }
  0x79   :  { %v505_v50 = vsub.f32 %v493_v48, %v499_v38  ;;  %v506_v58 = vmax.f32 %v500_v52, 0.0  ;;  %v508_v61 = vmax.f32 %v502_v53, 0.0  ;;  %v593_v35 = vsub.s32 4, %v1661_v30 }
  0x7a   :  { %v510_v62 = vmax.f32 %v504_v55, 0.0  ;;  %v507_v63 = vmax.f32 %v501_v42, 0.0  ;;  %v509_v2 = vmax.f32 %v503_v54, 0.0  ;;  %v597_v36 = vsub.s32 5, %v1661_v30 }
  0x7b   :  { %v511_v4 = vmax.f32 %v505_v50, 0.0  ;;  %v512_v1 = vadd.f32 1e-05, %v506_v58  ;;  %v514_v7 = vadd.f32 1e-05, %v508_v61 }
  0x7c   :  { %v513_v8 = vadd.f32 1e-05, %v507_v63  ;;  %v515_v10 = vadd.f32 1e-05, %v509_v2  ;;  %v516_v12 = vadd.f32 1e-05, %v510_v62 }
  0x7d   :  { %1462 = vrsqrt.f32 %v512_v1  ;;  %v517_v13 = vadd.f32 1e-05, %v511_v4 }
  0x7e   :  { %1464 = vrsqrt.f32 %v513_v8 }
  0x7f   :  { %1466 = vrsqrt.f32 %v514_v7 }
  0x80   :  { %1468 = vrsqrt.f32 %v515_v10 }
  0x81   :  { %1470 = vrsqrt.f32 %v516_v12 }
  0x82   :  { %1472 = vrsqrt.f32 %v517_v13 }
  0x8a   :  { %v1463_v15 = vpop.eup %1462 }
  0x8b   :  { %v1465_v16 = vpop.eup %1464 }
  0x8c   :  { %v1467_v3 = vpop.eup %1466  ;;  %v531_v17 = vcombine.low %v1463_v15, %v1465_v16 }
  0x8d   :  { %v1469_v18 = vpop.eup %1468 }
  0x8e   :  { %v1471_v19 = vpop.eup %1470  ;;  %v532_v20 = vcombine.low %v1467_v3, %v1469_v18  ;;  %v540_v21 = vrot.slane %v531_v17, %v1670_v46 }
  0x8f   :  { %v1473_v22 = vpop.eup %1472 }
  0x90   :  { %v533_v11 = vcombine.low %v1471_v19, %v1473_v22  ;;  %v547_v23 = vrot.slane %v532_v20, %v1670_v46 }
  0x92   :  { %v554_v25 = vrot.slane %v533_v11, %v1670_v46  ;;  %v555_v26 = vcombine.low %v540_v21, %v547_v23  ;;  %v573_v21 = vld [vmem:[#allocation7] sm:$0x3f] }
  0x94   :  { %v562_v28 = vrot.slane %v555_v26, %v1670_v46  ;;  %v569_v29 = vrot.slane %v554_v25, %v1670_v46 }
  0x96   :  { %v570_v33 = vcombine.low %v562_v28, %v569_v29 }
  0x98   :  { %v572_v38 = vmul.f32 %v570_v33, %v524_v31 }
  0x9a   :  { %v578_v39 = vrot.slane %v572_v38, %v577_v32  ;;  %v582_v44 = vrot.slane %v572_v38, %v581_v24  ;;  %v586_v41 = vrot.slane %v572_v38, %v585_v27  ;;  %v590_v45 = vrot.slane %v572_v38, %v589_v34 }
  0x9b   :  { %v594_v47 = vrot.slane %v572_v38, %v593_v35  ;;  %v598_v48 = vrot.slane %v572_v38, %v597_v36 }
  0x9c   :  { %v605_v52 = vmul.f32 %v578_v39, %v1778_v57  ;;  %v606_v53 = vmul.f32 %v582_v44, %v1780_v51  ;;  %v607_v55 = vmul.f32 %v586_v41, %v1782_v60  ;;  %v608_v42 = vmul.f32 %v590_v45, %v1784_v6 }
  0x9d   :  { %v609_v54 = vmul.f32 %v594_v47, %v1786_v9  ;;  %v610_v50 = vmul.f32 %v598_v48, %v1788_v14  ;;  %v659_v58 = vcombine.low %v578_v39, %v582_v44  ;;  %v660_v61 = vcombine.high %v578_v39, %v582_v44 }
  0x9e   :  { %v617_v62 = vcombine.low %v605_v52, %v606_v53  ;;  %v618_v63 = vcombine.low %v607_v55, %v608_v42  ;;  %v661_v2 = vcombine.low %v586_v41, %v590_v45  ;;  %v662_v4 = vcombine.high %v586_v41, %v590_v45 }
  0x9f   :  { %v619_v1 = vcombine.low %v609_v54, %v610_v50  ;;  %v663_v7 = vcombine.low %v594_v47, %v598_v48  ;;  %v664_v8 = vcombine.high %v594_v47, %v598_v48  ;;  %v671_v57 = vrot.slane %v659_v58, %v1670_v46 }
  0xa0   :  { %v626_v51 = vrot.slane %v617_v62, %v1670_v46  ;;  %v633_v60 = vrot.slane %v618_v63, %v1670_v46  ;;  %v678_v6 = vrot.slane %v660_v61, %v1670_v46  ;;  %v685_v9 = vrot.slane %v661_v2, %v1670_v46 }
  0xa1   :  { %v640_v14 = vrot.slane %v619_v1, %v1670_v46  ;;  %v692_v10 = vrot.slane %v662_v4, %v1670_v46  ;;  %v699_v12 = vrot.slane %v663_v7, %v1670_v46  ;;  %v706_v13 = vrot.slane %v664_v8, %v1670_v46 }
  0xa2   :  { %v641_v15 = vcombine.low %v626_v51, %v633_v60  ;;  %v707_v16 = vcombine.low %v671_v57, %v685_v9  ;;  %v708_v17 = vcombine.high %v671_v57, %v685_v9 }
  0xa3   :  { %v655_v3 = vrot.slane %v640_v14, %v1670_v46  ;;  %v709_v18 = vcombine.low %v678_v6, %v692_v10  ;;  %v711_v19 = vcombine.high %v699_v12, %v699_v12  ;;  %v710_v22 = vcombine.high %v678_v6, %v692_v10 }
  0xa4   :  { %v648_v20 = vrot.slane %v641_v15, %v1670_v46  ;;  %v712_v11 = vcombine.high %v706_v13, %v706_v13  ;;  %v719_v23 = vrot.slane %v707_v16, %v1670_v46  ;;  %v747_v28 = vrot.slane %v699_v12, %v1670_v46 }
  0xa5   :  { %v726_v26 = vrot.slane %v709_v18, %v1670_v46  ;;  %v754_v29 = vrot.slane %v706_v13, %v1670_v46  ;;  %v733_v31 = vrot.slane %v708_v17, %v1670_v46  ;;  %v761_v33 = vrot.slane %v711_v19, %v1670_v46 }
  0xa6   :  { %v656_v25 = vcombine.low %v648_v20, %v655_v3  ;;  %v740_v39 = vrot.slane %v710_v22, %v1670_v46  ;;  %v768_v44 = vrot.slane %v712_v11, %v1670_v46  ;;  %v769_v41 = vcombine.low %v719_v23, %v747_v28 }
  0xa7   :  { %v770_v45 = vcombine.high %v719_v23, %v747_v28  ;;  %v771_v47 = vcombine.low %v726_v26, %v754_v29  ;;  %v772_v48 = vcombine.high %v726_v26, %v754_v29  ;;  %v773_v52 = vcombine.low %v733_v31, %v761_v33 }
  0xa8   :  { %v658_v38 = vsub.f32 %v573_v21, %v656_v25  ;;  %v774_v54 = vcombine.high %v733_v31, %v761_v33  ;;  %v775_v62 = vcombine.low %v740_v39, %v768_v44  ;;  %v776_v63 = vcombine.high %v740_v39, %v768_v44 }
  0xa9   :  { %v786_v60 = vmul.f32 %v773_v52, %v1665_v40 }
  0xaa   :  { %v797_v53 = vrot.slane %v658_v38, %v577_v32  ;;  %v801_v55 = vrot.slane %v658_v38, %v581_v24  ;;  %v805_v42 = vrot.slane %v658_v38, %v585_v27  ;;  %v809_v50 = vrot.slane %v658_v38, %v589_v34 }
  0xab   :  { %v813_v58 = vrot.slane %v658_v38, %v593_v35  ;;  %v817_v61 = vrot.slane %v658_v38, %v597_v36  ;;  %v785_v24 = vmul.f32 %v769_v41, %v1663_v37  ;;  %v787_v27 = vmul.f32 %v770_v45, %v1667_v43 }
  0xac   :  { %v818_v2 = vcombine.low %v797_v53, %v801_v55  ;;  %v819_v4 = vcombine.high %v797_v53, %v801_v55  ;;  %v820_v1 = vcombine.low %v805_v42, %v809_v50  ;;  %v821_v7 = vcombine.high %v805_v42, %v809_v50 }
  0xad   :  { %v822_v8 = vcombine.low %v813_v58, %v817_v61  ;;  %v823_v32 = vcombine.high %v813_v58, %v817_v61  ;;  %v788_v6 = vmul.f32 %v774_v54, %v1672_v49  ;;  %v789_v37 = vmul.f32 %v771_v47, %v1678_v56 }
  0xae   :  { %v830_v34 = vrot.slane %v818_v2, %v1670_v46  ;;  %v837_v57 = vrot.slane %v819_v4, %v1670_v46  ;;  %v844_v35 = vrot.slane %v820_v1, %v1670_v46  ;;  %v851_v30 = vrot.slane %v821_v7, %v1670_v46 }
  0xaf   :  { %v858_v36 = vrot.slane %v822_v8, %v1670_v46  ;;  %v865_v51 = vrot.slane %v823_v32, %v1670_v46  ;;  %v791_v43 = vmul.f32 %v772_v48, %v1686_v0  ;;  %v790_v0 = vmul.f32 %v775_v62, %v1680_v59 }
  0xb0   :  { %v866_v9 = vcombine.low %v830_v34, %v844_v35  ;;  %v867_v14 = vcombine.high %v830_v34, %v844_v35  ;;  %v868_v10 = vcombine.low %v837_v57, %v851_v30  ;;  %v869_v12 = vcombine.high %v837_v57, %v851_v30 }
  0xb1   :  { %v870_v13 = vcombine.high %v858_v36, %v858_v36  ;;  %v871_v15 = vcombine.high %v865_v51, %v865_v51  ;;  %v906_v16 = vrot.slane %v858_v36, %v1670_v46  ;;  %v913_v3 = vrot.slane %v865_v51, %v1670_v46 }
  0xb2   :  { %v878_v17 = vrot.slane %v866_v9, %v1670_v46  ;;  %v885_v40 = vrot.slane %v868_v10, %v1670_v46  ;;  %v892_v49 = vrot.slane %v867_v14, %v1670_v46  ;;  %v899_v56 = vrot.slane %v869_v12, %v1670_v46 }
  0xb3   :  { %v792_v18 = vmul.f32 %v776_v63, %v1690_v5  ;;  %v920_v19 = vrot.slane %v870_v13, %v1670_v46  ;;  %v927_v20 = vrot.slane %v871_v15, %v1670_v46  ;;  %v1200_v15 = vld [vmem:[#allocation8 + $0x2f0] sm:$0xff] }
  0xb4   :  { %v928_v21 = vcombine.low %v878_v17, %v906_v16  ;;  %v929_v22 = vcombine.high %v878_v17, %v906_v16  ;;  %v930_v11 = vcombine.low %v885_v40, %v913_v3  ;;  %v931_v23 = vcombine.high %v885_v40, %v913_v3  ;;  %v1195_v17 = vld [vmem:[#allocation8 + $0x2c8] sm:$0xff]  ;;  %v1189_v40 = vld [vmem:[#allocation8 + $0x298] sm:$0xff] }
  0xb5   :  { %v932_v25 = vcombine.low %v892_v49, %v920_v19  ;;  %v933_v26 = vcombine.high %v892_v49, %v920_v19  ;;  %v934_v28 = vcombine.low %v899_v56, %v927_v20  ;;  %v935_v29 = vcombine.high %v899_v56, %v927_v20  ;;  %v1188_v49 = vld [vmem:[#allocation8 + $0x290] sm:$0xff]  ;;  %v1183_v56 = vld [vmem:[#allocation8 + $0x268] sm:$0xff] }
  0xb6   :  { %v944_v31 = vadd.f32 %v928_v21, %v785_v24  ;;  %v946_v33 = vadd.f32 %v929_v22, %v787_v27  ;;  %v948_v38 = vadd.f32 %v930_v11, %v789_v37  ;;  %v950_v39 = vadd.f32 %v931_v23, %v791_v43  ;;  %v1176_v19 = vld [vmem:[#allocation8 + $0x230] sm:$0xff]  ;;  %v1171_v20 = vld [vmem:[#allocation8 + $0x208] sm:$0xff]  ;;  %v1170_v21 = vld [vmem:[#allocation8 + $0x200] sm:$0xff] }
  0xb7   :  { %v945_v44 = vadd.f32 %v932_v25, %v786_v60  ;;  %v947_v59 = vadd.f32 %v933_v26, %v788_v6  ;;  %v949_v41 = vadd.f32 %v934_v28, %v790_v0  ;;  %v951_v5 = vadd.f32 %v935_v29, %v792_v18  ;;  %v1182_v0 = vld [vmem:[#allocation8 + $0x260] sm:$0xff]  ;;  %v1177_v18 = vld [vmem:[#allocation8 + $0x238] sm:$0xff]  ;;  %v1164_v11 = vld [vmem:[#allocation8 + $0x1d0] sm:$0xff] }
  0xb8   :  { %v1165_v22 = vld [vmem:[#allocation8 + $0x1d8] sm:$0xff]  ;;  %v1159_v23 = vld [vmem:[#allocation8 + $0x1a8] sm:$0xff]  ;;  %v1158_v25 = vld [vmem:[#allocation8 + $0x1a0] sm:$0xff] }
  0xb9   :  { %v960_v45 = vcombine.low %v944_v31, %v945_v44  ;;  %v962_v47 = vcombine.low %v946_v33, %v947_v59  ;;  %v964_v48 = vcombine.low %v948_v38, %v949_v41  ;;  %v966_v52 = vcombine.low %v950_v39, %v951_v5  ;;  %v1153_v26 = vld [vmem:[#allocation8 + $0x178] sm:$0xff]  ;;  %v1152_v28 = vld [vmem:[#allocation8 + $0x170] sm:$0xff]  ;;  %v1147_v29 = vld [vmem:[#allocation8 + $0x148] sm:$0xff] }
  0xba   :  { %v961_v53 = vcombine.high %v944_v31, %v945_v44  ;;  %v963_v55 = vcombine.high %v946_v33, %v947_v59  ;;  %v965_v42 = vcombine.high %v948_v38, %v949_v41  ;;  %v967_v54 = vcombine.high %v950_v39, %v951_v5  ;;  %v1146_v31 = vld [vmem:[#allocation8 + $0x140] sm:$0xff]  ;;  %v1141_v33 = vld [vmem:[#allocation8 + $0x118] sm:$0xff]  ;;  %v1140_v38 = vld [vmem:[#allocation8 + $0x110] sm:$0xff] }
  0xbb   :  { %v974_v50 = vrot.slane %v960_v45, %v1670_v46  ;;  %v988_v58 = vrot.slane %v962_v47, %v1670_v46  ;;  %v1002_v61 = vrot.slane %v964_v48, %v1670_v46  ;;  %v1016_v62 = vrot.slane %v966_v52, %v1670_v46  ;;  %v1135_v39 = vld [vmem:[#allocation8 + $0xe8] sm:$0xff]  ;;  %v1134_v44 = vld [vmem:[#allocation8 + $0xe0] sm:$0xff]  ;;  %v1129_v59 = vld [vmem:[#allocation8 + $0xb8] sm:$0xff] }
  0xbc   :  { %v981_v63 = vrot.slane %v961_v53, %v1670_v46  ;;  %v995_v2 = vrot.slane %v963_v55, %v1670_v46  ;;  %v1009_v4 = vrot.slane %v965_v42, %v1670_v46  ;;  %v1023_v1 = vrot.slane %v967_v54, %v1670_v46  ;;  %v1128_v41 = vld [vmem:[#allocation8 + $0xb0] sm:$0xff]  ;;  %v1123_v5 = vld [vmem:[#allocation8 + $0x88] sm:$0xff]  ;;  %v1122_v45 = vld [vmem:[#allocation8 + $0x80] sm:$0xff] }
  0xbd   :  { %v1025_v7 = vcombine.high %v974_v50, %v988_v58  ;;  %v1029_v8 = vcombine.high %v1002_v61, %v1016_v62  ;;  %v1024_v32 = vcombine.low %v974_v50, %v988_v58  ;;  %v1028_v24 = vcombine.low %v1002_v61, %v1016_v62  ;;  %v1117_v47 = vld [vmem:[#allocation8 + $0x58] sm:$0xff]  ;;  %v1116_v48 = vld [vmem:[#allocation8 + $0x50] sm:$0xff]  ;;  %v1111_v52 = vld [vmem:[#allocation8 + $0x28] sm:$0xff] }
  0xbe   :  { %v1027_v27 = vcombine.high %v981_v63, %v995_v2  ;;  %v1031_v34 = vcombine.high %v1009_v4, %v1023_v1  ;;  %v1026_v57 = vcombine.low %v981_v63, %v995_v2  ;;  %v1030_v35 = vcombine.low %v1009_v4, %v1023_v1  ;;  %v1110_v53 = vld [vmem:[#allocation8 + $0x20] sm:$0xff] }
  0xbf   :  { %v1052_v30 = vrot.slane %v1025_v7, %v1670_v46  ;;  %v1080_v36 = vrot.slane %v1029_v8, %v1670_v46  ;;  %v1038_v51 = vrot.slane %v1024_v32, %v1670_v46  ;;  %v1066_v60 = vrot.slane %v1028_v24, %v1670_v46 }
  0xc0   :  { %v1059_v6 = vrot.slane %v1027_v27, %v1670_v46  ;;  %v1087_v37 = vrot.slane %v1031_v34, %v1670_v46  ;;  %v1045_v43 = vrot.slane %v1026_v57, %v1670_v46  ;;  %v1073_v9 = vrot.slane %v1030_v35, %v1670_v46  ;;  %v1194_v46 = vld [vmem:[#allocation8 + $0x2c0] sm:$0xff] }
  0xc1   :  { %v1091_v14 = vcombine.low %v1052_v30, %v1080_v36  ;;  %v1088_v10 = vcombine.low %v1038_v51, %v1066_v60  ;;  %v1092_v12 = vcombine.high %v1052_v30, %v1080_v36  ;;  %v1089_v13 = vcombine.high %v1038_v51, %v1066_v60 }
  0xc2   :  { %v1093_v16 = vcombine.low %v1059_v6, %v1087_v37  ;;  %v1892_v3 = vcombine.low %v1045_v43, %v1073_v9 }
  0xc3   :  { %1101 = vst [vmem:[#allocation11 + $0x8] sm:$0xff] %v1091_v14  ;;  %1273 = vmatprep.mubr.f32.mxu0 %v1091_v14  ;;  %1100 = vst [vmem:[#allocation11] sm:$0xff] %v1088_v10  ;;  %1343 = vmatprep.mubr.f32.mxu1 %v1092_v12 }
  0xc4   :  { %1103 = vst [vmem:[#allocation11 + $0x18] sm:$0xff] %v1092_v12  ;;  %1102 = vst [vmem:[#allocation11 + $0x10] sm:$0xff] %v1089_v13  ;;  %1274 = vmatmul.mubr.f32.vlgmr.msra.gmra.mxu0 %v1088_v10  ;;  %1344 = vmatmul.mubr.f32.vlgmr.msra.gmra.mxu1 %v1089_v13 }
  0xc5   :  { %1105 = vst [vmem:[#allocation11 + $0x28] sm:$0xff] %v1093_v16  ;;  %1104 = vst [vmem:[#allocation11 + $0x20] sm:$0xff] %v1892_v3  ;;  %1350 = vmatpush1.xpose.msra.mxu0 %v1200_v15  ;;  %1413 = vmatprep.mubr.f32.mxu0 %v1093_v16 }
  0xc6   :  { %1351 = vmatprep.subr.mxu0 %v1195_v17 }
  0xc9   :  { %1352 = vmatpush1.xpose.msra.mxu0 %v1194_v46 }
  0xca   :  { %1353 = vmatprep.subr.mxu0 %v1189_v40 }
  0xcd   :  { %1354 = vmatpush1.xpose.msra.mxu0 %v1188_v49 }
  0xce   :  { %1355 = vmatprep.subr.mxu0 %v1183_v56 }
  0xd1   :  { %1356 = vmatpush1.xpose.msra.mxu0 %v1182_v0 }
  0xd2   :  { %1357 = vmatprep.subr.mxu0 %v1177_v18 }
  0xd5   :  { %1358 = vmatpush1.xpose.msra.mxu0 %v1176_v19 }
  0xd6   :  { %1359 = vmatprep.subr.mxu0 %v1171_v20 }
  0xd9   :  { %1360 = vmatpush1.xpose.msra.mxu0 %v1170_v21 }
  0xda   :  { %1361 = vmatprep.subr.mxu0 %v1165_v22 }
  0xdd   :  { %1362 = vmatpush1.xpose.msra.mxu0 %v1164_v11 }
  0xde   :  { %1363 = vmatprep.subr.mxu0 %v1159_v23 }
  0xe1   :  { %1364 = vmatpush1.xpose.msra.mxu0 %v1158_v25 }
  0xe2   :  { %1365 = vmatprep.subr.mxu0 %v1153_v26 }
  0xe5   :  { %1366 = vmatpush1.xpose.msra.mxu0 %v1152_v28 }
  0xe6   :  { %1367 = vmatprep.subr.mxu0 %v1147_v29 }
  0xe9   :  { %1368 = vmatpush1.xpose.msra.mxu0 %v1146_v31 }
  0xea   :  { %1369 = vmatprep.subr.mxu0 %v1141_v33 }
  0xed   :  { %1370 = vmatpush1.xpose.msra.mxu0 %v1140_v38 }
  0xee   :  { %1371 = vmatprep.subr.mxu0 %v1135_v39 }
  0xf1   :  { %1372 = vmatpush1.xpose.msra.mxu0 %v1134_v44 }
  0xf2   :  { %1373 = vmatprep.subr.mxu0 %v1129_v59 }
  0xf5   :  { %1374 = vmatpush1.xpose.msra.mxu0 %v1128_v41 }
  0xf6   :  { %1375 = vmatprep.subr.mxu0 %v1123_v5 }
  0xf9   :  { %1376 = vmatpush1.xpose.msra.mxu0 %v1122_v45 }
  0xfa   :  { %1377 = vmatprep.subr.mxu0 %v1117_v47 }
  0xfd   :  { %1378 = vmatpush1.xpose.msra.mxu0 %v1116_v48 }
  0xfe   :  { %1379 = vmatprep.subr.mxu0 %v1111_v52 }
 0x101   :  { %1380 = vmatpush1.xpose.msra.mxu0 %v1110_v53 }
 0x104   :  { %1414 = vmatmul.mubr.f32.vlgmr.msra.gmra.mxu0 %v1892_v3 }
 0x105   :  { %1565 = shalt.err (!%p1562_p10)
}
 0x106   :  { %1439 = dma.vmem_to_hbm [thread:$0]  %s1437_s3, 768, %s1911_s6, [#allocation12]   ;;  %v1451_v58 = vld [vmem:[%s1909_s4] ss:$0 sm:$0xff] }
 0x107   :  { %s1613_s23 = smov [#allocation10]  }
 0x108   :  { %s1426_s24 = sshll.u32 %s1613_s23, 4  ;;  %s1427_s24 = int_to_ptr.vmem [resolvable:$true] %s1426_s24 }
 0x109   :  { %s1574_s25 = scalar_lea.vmem %s1427_s24, 128  ;;  %p1579_p12 = scmp.lt.s32.totalorder %s1427_s24, %s1427_s24 }
 0x10a   :  { %p1575_p11 = scmp.ne.s32.totalorder %s1427_s24, %s1574_s25  ;;  %p1580_p13 = scmp.lt.s32.totalorder %s1574_s25, %s1574_s25 }
 0x10c   :  { %p1581_p0 = por %p1580_p13, %p1579_p12 }
 0x10e   :  { %p1582_p1 = pnand %p1581_p0, %p1575_p11 }
 0x184   :  { %v1275_v55 = vpop.f32.mrf.mxu0  ;;  %v1345_v42 = vpop.f32.mrf.mxu1 }
 0x185   :  { %v1276_v61 = vadd.f32 %v1451_v58, %v1275_v55 }
 0x186   :  { %v1277_v54 = vpop.f32.mrf.mxu0  ;;  %v1347_v50 = vpop.f32.mrf.mxu1 }
 0x187   :  { %v1346_v62 = vadd.f32 %v1345_v42, %v1276_v61 }
 0x1c4   :  { %v1415_v63 = vpop.f32.mrf.mxu0 }
 0x1c5   :  { %v1416_v2 = vadd.f32 %v1415_v63, %v1346_v62 }
 0x1c6   :  { %v1417_v4 = vpop.f32.mrf.mxu0 }
 0x1c7   :  { %1419 = vst [vmem:[#allocation10] sm:$0xff] %v1416_v2 }
 0x1c8   :  { %1585 = shalt.err (!%p1582_p1)
}
 0x1c9   :  { %1429 = dma.vmem_to_hbm [thread:$0]  %s1427_s24, 128, %s1910_s5, [#allocation4]  }
 0x1ca   :  { %1600 = dma.done.wait [#allocation4], 128  }
 0x1cb   :  { %1601 = vsyncadd [#allocation4], 4294967168 }
 0x1cc   :  { %1602 = dma.done.wait [#allocation12], 768  }
 0x1cd   :  { %1603 = vsyncadd [#allocation12], 4294966528 }
 0x1ce   :  { %1446 = vsyncpa [#allocation3], 1 }
 0x1cf   :  { %1447 = vsyncpa [#allocation6], 1 }
 0x1d0   :  { %1448 = vsyncpa [#allocation9], 1 }
 0x1d1   :  { %1449 = vsyncpa [#allocation4], 1 }
 0x1d2   :  { %1450 = vsyncpa [#allocation12], 1 }

</bundles_post_ra>
